<compile_context>
chip_gen: v7x
topology: tpu7x:2x2x1
jax: 0.10.0
libtpu: 0.0.40
codegen_flags: <defaults>
</compile_context>

<pallas_src>
import jax
import jax.numpy as jnp
from jax.experimental import pallas as pl
from jax.experimental.pallas import tpu as pltpu

IN_FEATURES = 784
OUT_FEATURES = 1


def _tile_and_vmem_limit():
    """Generation-sized batch tile (rows of x per grid step) + scoped-VMEM limit."""
    try:
        kind = jax.devices()[0].device_kind.lower()
    except Exception:
        kind = ""
    if "v7" in kind:
        # 64 MiB VMEM/TC hard ceiling: x buffers 2 x (4096 x 896 x 4B) ~= 28.7 MiB.
        return 4096, 48 << 20
    if "v6" in kind:
        # Roofline saturates around 512-1024 rows; 2048 keeps 2 x 7.3 MiB of x
        # buffers comfortably inside the (raised) scoped-VMEM limit.
        return 2048, 64 << 20
    # v5e / unknown: 128 MiB physical, but the 16 MiB default scope is too small
    # for 2 x 7.3 MiB x buffers, so raise it.
    return 2048, 48 << 20


def linear_kernel(x_ref, w_ref, b_ref, o_ref):
    # x_ref: (TM, 784) f32 VMEM  -- one batch tile (double-buffered by Pallas)
    # w_ref: (1, 784)  f32 VMEM  -- lane-dense weight, resident across grid steps
    # b_ref: (1, 1)    f32 SMEM  -- scalar bias
    # o_ref: (1, TM)   f32 VMEM  -- lane-dense output tile (y^T)
    acc = jax.lax.dot_general(
        w_ref[...],
        x_ref[...],
        dimension_numbers=(((1,), (1,)), ((), ())),  # contract over the 784 features
        preferred_element_type=jnp.float32,
        precision=jax.lax.Precision.HIGHEST,          # full-f32; hidden under the x DMA
    )                                                 # -> (1, TM) = w @ x_tile^T
    o_ref[...] = (acc + b_ref[0, 0]).astype(o_ref.dtype)


def linear_forward(x_nchw, w, b, tm=None, vmem_limit_bytes=None):
    """x_nchw: (B, 1, 28, 28) f32, w: (1, 784) torch-layout weight, b: (1,) -> (B, 1)."""
    B = x_nchw.shape[0]
    x2d = x_nchw.reshape(B, IN_FEATURES).astype(jnp.float32)  # == torch x.view(-1, 784)
    w_row = w.reshape(1, IN_FEATURES).astype(jnp.float32)     # lane-dense weight
    b2d = b.reshape(1, 1).astype(jnp.float32)

    default_tm, default_vmem = _tile_and_vmem_limit()
    if tm is None:
        tm = default_tm
    if vmem_limit_bytes is None:
        vmem_limit_bytes = default_vmem

    if B <= tm:
        # Single block: block dims equal to the full array dims are always legal,
        # so no padding is needed for small / odd batch sizes.
        tm = B
    # else: tm is a multiple of 8 and 128, so a partial last tile is legal and
    # its out-of-bounds rows / output lanes are masked by Pallas edge handling.

    grid = (pl.cdiv(B, tm),)

    out = pl.pallas_call(
        linear_kernel,
        out_shape=jax.ShapeDtypeStruct((1, B), jnp.float32),  # y^T, lane-dense
        grid_spec=pltpu.PrefetchScalarGridSpec(
            num_scalar_prefetch=0,
            grid=grid,
            in_specs=[
                # x: one batch tile per grid step (double-buffered by Pallas).
                pl.BlockSpec((tm, IN_FEATURES), lambda i: (i, 0)),
                # weight: same block every step -> stays VMEM-resident.
                pl.BlockSpec((1, IN_FEATURES), lambda i: (0, 0)),
                # bias: scalar in SMEM.
                pl.BlockSpec(memory_space=pltpu.MemorySpace.SMEM),
            ],
            # Lane-dense output tile: (1, tm) slice of the (1, B) output row.
            out_specs=pl.BlockSpec((1, tm), lambda i: (0, i)),
        ),
        compiler_params=pltpu.CompilerParams(
            # Batch tiles are independent -> let a multi-TC chip (v7x) shard them.
            dimension_semantics=("parallel",),
            vmem_limit_bytes=vmem_limit_bytes,
        ),
        cost_estimate=pl.CostEstimate(
            flops=2 * B * IN_FEATURES,
            transcendentals=0,
            bytes_accessed=B * IN_FEATURES * 4 + IN_FEATURES * 4 + 4 + B * 4,
        ),
    )(x2d, w_row, b2d)

    # (1, B) -> (B, 1): contiguous reshape, effectively free.
    return out.reshape(B, OUT_FEATURES)


if __name__ == "__main__":
    key = jax.random.PRNGKey(0)
    kx, kw, kb = jax.random.split(key, 3)

    # Deterministic parameter init (shapes from nn.Linear(784, 1)):
    # PyTorch initializes uniform(-1/sqrt(784), 1/sqrt(784)).
    bound = 1.0 / jnp.sqrt(784.0)
    w = jax.random.uniform(kw, (OUT_FEATURES, IN_FEATURES), jnp.float32, -bound, bound)
    b = jax.random.uniform(kb, (OUT_FEATURES,), jnp.float32, -bound, bound)

    # Exact f32 reference (elementwise multiply + reduce; no MXU involved).
    def ref_fn(x_nchw):
        x2d = x_nchw.reshape(-1, IN_FEATURES)
        return jnp.sum(x2d * w.reshape(1, IN_FEATURES), axis=-1, keepdims=True) + b.reshape(1, 1)

    # Case 1: small MNIST-like batch, NCHW, single block path.
    B = 8
    x = jax.random.normal(kx, (B, 1, 28, 28), jnp.float32)
    y = linear_forward(x, w, b)
    jax.block_until_ready(y)
    assert y.shape == (B, OUT_FEATURES)
    assert jnp.allclose(y, ref_fn(x), atol=1e-5, rtol=1e-5)

    # Case 2: non-dividing batch with a small forced tile to exercise the
    # tiled grid + masked edge-block path introduced by removing the pad.
    B2 = 300
    x2 = jax.random.normal(jax.random.PRNGKey(1), (B2, 1, 28, 28), jnp.float32)
    y2 = linear_forward(x2, w, b, tm=128)
    jax.block_until_ready(y2)
    assert y2.shape == (B2, OUT_FEATURES)
    assert jnp.allclose(y2, ref_fn(x2), atol=1e-5, rtol=1e-5)

    print("KERNEL_OK")
</pallas_src>

<mosaic_0001>
module attributes {stable_mosaic.version = 11 : i64} {
  func.func @linear_kernel(%arg0: i32, %arg1: memref<8x784xf32, #tpu.memory_space<vmem>>, %arg2: memref<1x784xf32, #tpu.memory_space<vmem>>, %arg3: memref<1x1xf32, #tpu.memory_space<smem>>, %arg4: memref<1x8xf32, #tpu.memory_space<vmem>>) attributes {dimension_semantics = [#tpu.dimension_semantics<parallel>], iteration_bounds = array<i64: 1>, scalar_prefetch = 0 : i64, scratch_operands = 0 : i64, tpu.core_type = #tpu.core_type<tc>, window_params = [{transform_indices = @transform_0, window_bounds = array<i64: 8, 784>}, {pipeline_mode = #tpu.pipeline_mode<synchronous>, transform_indices = @transform_1, window_bounds = array<i64: 1, 784>}, {transform_indices = @transform_2, window_bounds = array<i64: 1, 1>}, {transform_indices = @transform_3, window_bounds = array<i64: 1, 8>}]} {
    %c0 = arith.constant 0 : index
    %c0_0 = arith.constant 0 : index
    %0 = vector.load %arg2[%c0, %c0_0] : memref<1x784xf32, #tpu.memory_space<vmem>>, vector<1x784xf32>
    %c0_1 = arith.constant 0 : index
    %c0_2 = arith.constant 0 : index
    %1 = vector.load %arg1[%c0_1, %c0_2] : memref<8x784xf32, #tpu.memory_space<vmem>>, vector<8x784xf32>
    %cst = arith.constant dense<0.000000e+00> : vector<1x8xf32>
    %2 = tpu.matmul %0, %1, %cst {dimension_numbers = #tpu.dot_dimension_numbers<[1], [1], [0], [0], [0, 0, 1, 0], [], []>, precision = #tpu.contract_precision<fp32>} : vector<1x784xf32>, vector<8x784xf32>, vector<1x8xf32> -> vector<1x8xf32>
    %c0_3 = arith.constant 0 : index
    %c0_4 = arith.constant 0 : index
    %3 = memref.load %arg3[%c0_3, %c0_4] : memref<1x1xf32, #tpu.memory_space<smem>>
    %4 = vector.broadcast %3 : f32 to vector<1x8xf32>
    %5 = arith.addf %2, %4 : vector<1x8xf32>
    %c0_5 = arith.constant 0 : index
    %c0_6 = arith.constant 0 : index
    %6 = vector.load %arg4[%c0_5, %c0_6] : memref<1x8xf32, #tpu.memory_space<vmem>>, vector<1x8xf32>
    tpu.vector_store %arg4[%c0_5, %c0_6], %5 {strides = array<i32>} : memref<1x8xf32, #tpu.memory_space<vmem>>, vector<1x8xf32>,
    return
  }
  func.func @transform_0(%arg0: i32) -> (i32, i32) {
    %c0_i32 = arith.constant 0 : i32
    %c0_i32_0 = arith.constant 0 : i32
    return %arg0, %c0_i32 : i32, i32
  }
  func.func @transform_1(%arg0: i32) -> (i32, i32) {
    %c0_i32 = arith.constant 0 : i32
    %c0_i32_0 = arith.constant 0 : i32
    %c0_i32_1 = arith.constant 0 : i32
    return %c0_i32, %c0_i32_0 : i32, i32
  }
  func.func @transform_2(%arg0: i32) -> (i32, i32) {
    %c0_i32 = arith.constant 0 : i32
    %c0_i32_0 = arith.constant 0 : i32
    %c0_i32_1 = arith.constant 0 : i32
    return %c0_i32, %c0_i32_0 : i32, i32
  }
  func.func @transform_3(%arg0: i32) -> (i32, i32) {
    %c0_i32 = arith.constant 0 : i32
    %c0_i32_0 = arith.constant 0 : i32
    return %c0_i32, %arg0 : i32, i32
  }
}

</mosaic_0001>

<bundles_post_ra>
// kernel: tpu_custom_call.1
= control target key start
LH: loop header
LB: loop body
LE: loop exit
PB: predicated region body
PF: predicated region fallthrough
CT: control target
= control target key end

     0   :  { %9 = vsyncpa [#allocation4], 0  ;;  %s2293_s0 = inlined_call_operand.hbm [shape: f32[8,784], index: 0, kind: input, shape index: {}]   ;;  %s2294_s1 = inlined_call_operand.vmem [shape: f32[1,784], index: 1, kind: input, shape index: {}]   ;;  %s2295_s2 = inlined_call_operand.<no memory space> [shape: f32[1,1], index: 2, kind: input, shape index: {}]   ;;  %s2296_s3 = inlined_call_operand.hbm [shape: f32[1,8], index: 3, kind: output, shape index: {}]  }
   0x1   :  { %10 = vsyncpa [#allocation5], 0  ;;  %s2098_s12 = smov [#allocation3]   ;;  %s2050_s16 = scalar_lea.hbm %s2293_s0, 896 }
   0x2   :  { %s17_s13 = sshll.u32 %s2098_s12, 4  ;;  %p2051_p0 = scmp.ne.s32.totalorder %s2293_s0, %s2050_s16  ;;  %s18_s13 = int_to_ptr.vmem [resolvable:$true] %s17_s13 }
   0x3   :  { %p2054_p1 = scmp.lt.u32.totalorder %s2050_s16, %s2293_s0 }
   0x5   :  { %p2056_p2 = pnand %p2054_p1, %p2051_p0 }
   0x7   :  { %2059 = shalt.err (!%p2056_p2)
}
   0x8   :  { %s2060_s21 = scalar_lea.vmem %s18_s13, 896  ;;  %p2065_p4 = scmp.lt.s32.totalorder %s18_s13, %s18_s13 }
   0x9   :  { %p2061_p3 = scmp.ne.s32.totalorder %s18_s13, %s2060_s21  ;;  %p2066_p5 = scmp.lt.s32.totalorder %s2060_s21, %s2060_s21 }
   0xb   :  { %p2067_p6 = por %p2066_p5, %p2065_p4 }
   0xd   :  { %p2068_p7 = pnand %p2067_p6, %p2061_p3 }
   0xf   :  { %2071 = shalt.err (!%p2068_p7)
}
  0x10   :  { %20 = dma.hbm_to_vmem [thread:$0]  %s2293_s0, 896, %s18_s13, [#allocation4]  }
  0x11   :  { %2094 = dma.done.wait [#allocation4], 896  }
  0x12   :  { %2095 = vsyncadd [#allocation4], 4294966400  ;;  %v39_v0 = vlaneseq  ;;  %v30_v6 = vld [vmem:[#allocation3 + $0x8] sm:$0xff]  ;;  %v29_v7 = vld [vmem:[#allocation3] sm:$0xff]  ;;  %vm73_vm0 = vcmask 130048   ;;  %vm2100_vm1 = vmmov 0  }
  0x13   :  { %v34_v8 = vld [vmem:[#allocation3 + $0x28] sm:$0xff]  ;;  %v2140_v9 = vand.u32 4294901760, %v30_v6  ;;  %v2142_v10 = vand.u32 4294901760, %v29_v7  ;;  %v33_v12 = vld [vmem:[#allocation3 + $0x20] sm:$0xff]  ;;  %v32_v58 = vld [vmem:[#allocation3 + $0x18] sm:$0xff]  ;;  %s2101_s26 = smov [#allocation6]  }
  0x14   :  { %v2134_v1 = vshrl.u32 %v39_v0, 7  ;;  %v2144_v11 = vand.u32 4294901760, %v34_v8  ;;  %v2149_v13 = vld [vmem:[%s2294_s1] sm:$0x7f]  ;;  %v2151_v14 = vand.u32 4294901760, %v33_v12  ;;  %v2209_v61 = vand.u32 4294901760, %v32_v58 }
  0x15   :  { %80 = vmatprep.subr.mxu1 %v2140_v9  ;;  %v2158_v18 = vsub.f32 %v29_v7, %v2142_v10  ;;  %v2162_v19 = vsub.f32 %v30_v6, %v2140_v9  ;;  %v35_v63 = vld [vmem:[#allocation3 + $0x30] sm:$0xff]  ;;  %s1949_s27 = sshll.u32 %s2101_s26, 4  ;;  %vm1941_vm2 = vcmask 57344   ;;  %s1950_s27 = int_to_ptr.vmem [resolvable:$true] %s1949_s27 }
  0x16   :  { %v45_v2 = vsub.s32 1, %v2134_v1  ;;  %v61_v3 = vsub.s32 5, %v2134_v1  ;;  %v41_v4 = vsub.s32 0, %v2134_v1  ;;  %v57_v5 = vsub.s32 4, %v2134_v1  ;;  %1024 = vmatprep.subr.mxu0 %v2144_v11  ;;  %82 = vmatpush1.xpose.msra.mxu1 %v2142_v10  ;;  %s2072_s28 = scalar_lea.vmem %s1950_s27, 16  ;;  %s2076_s29 = scalar_lea.vmem %s1950_s27, 32 }
  0x17   :  { %1026 = vmatpush1.xpose.msra.mxu0 %v2151_v14  ;;  %v2168_v21 = vsub.f32 %v33_v12, %v2151_v14  ;;  %v163_v25 = vand.u32 4294901760, %v2162_v19  ;;  %v169_v26 = vand.u32 4294901760, %v2158_v18  ;;  %v1106_v28 = vsub.f32 %v34_v8, %v2144_v11  ;;  %p2073_p8 = scmp.ne.s32.totalorder %s1950_s27, %s2072_s28  ;;  %p2077_p9 = scmp.lt.s32.totalorder %s1950_s27, %s1950_s27 }
  0x18   :  { %v46_v15 = vrot.slane %v2149_v13, %v45_v2  ;;  %v62_v16 = vrot.slane %v2149_v13, %v61_v3  ;;  %v42_v17 = vrot.slane %v2149_v13, %v41_v4  ;;  %v58_v20 = vrot.slane %v2149_v13, %v57_v5  ;;  %p2078_p10 = scmp.lt.s32.totalorder %s2076_s29, %s2072_s28 }
  0x19   :  { %v1113_v32 = vand.u32 4294901760, %v2168_v21  ;;  %v164_v33 = vsub.f32 %v2162_v19, %v163_v25  ;;  %v170_v34 = vsub.f32 %v2158_v18, %v169_v26  ;;  %v1107_v36 = vand.u32 4294901760, %v1106_v28 }
  0x1a   :  { %v2170_v22 = vand.u32 4294901760, %v46_v15  ;;  %v2172_v23 = vand.u32 4294901760, %v62_v16  ;;  %v2174_v24 = vand.u32 4294901760, %v42_v17  ;;  %v2178_v27 = vand.u32 4294901760, %v58_v20  ;;  %p2079_p11 = por %p2078_p10, %p2077_p9 }
  0x1b   :  { %v1114_v40 = vsub.f32 %v2168_v21, %v1113_v32  ;;  %v165_v41 = vand.u32 4294901760, %v164_v33  ;;  %v1108_v43 = vsub.f32 %v1106_v28, %v1107_v36  ;;  %v171_v47 = vand.u32 4294901760, %v170_v34 }
  0x1c   :  { %v146_v29 = vsub.f32 %v46_v15, %v2170_v22  ;;  %v1090_v30 = vsub.f32 %v62_v16, %v2172_v23  ;;  %v152_v31 = vsub.f32 %v42_v17, %v2174_v24  ;;  %v1096_v35 = vsub.f32 %v58_v20, %v2178_v27  ;;  %p2080_p12 = pnand %p2079_p11, %p2073_p8 }
  0x1d   :  { %166 = vmatprep.subr.mxu1 %v165_v41  ;;  %v1109_v49 = vand.u32 4294901760, %v1108_v43  ;;  %v1115_v53 = vand.u32 4294901760, %v1114_v40  ;;  %v53_v55 = vsub.s32 3, %v2134_v1  ;;  %v65_v56 = vsub.s32 6, %v2134_v1 }
  0x1e   :  { %v147_v37 = vand.u32 4294901760, %v146_v29  ;;  %v1091_v38 = vand.u32 4294901760, %v1090_v30  ;;  %v153_v39 = vand.u32 4294901760, %v152_v31  ;;  %v1097_v42 = vand.u32 4294901760, %v1096_v35 }
  0x1f   :  { %1110 = vmatprep.subr.mxu0 %v1109_v49  ;;  %v54_v57 = vrot.slane %v2149_v13, %v53_v55  ;;  %v49_v59 = vsub.s32 2, %v2134_v1  ;;  %v66_v60 = vrot.slane %v2149_v13, %v65_v56  ;;  %v31_v1 = vld [vmem:[#allocation3 + $0x10] sm:$0xff]  ;;  %v77_v3 = vsel %vm73_vm0, %v35_v63, 0 }
  0x20   :  { %v148_v44 = vsub.f32 %v146_v29, %v147_v37  ;;  %v1092_v45 = vsub.f32 %v1090_v30, %v1091_v38  ;;  %v154_v46 = vsub.f32 %v152_v31, %v153_v39  ;;  %v1098_v48 = vsub.f32 %v1096_v35, %v1097_v42 }
  0x21   :  { %v2211_v62 = vand.u32 4294901760, %v54_v57  ;;  %v50_v0 = vrot.slane %v2149_v13, %v49_v59  ;;  %v74_v2 = vsel %vm73_vm0, %v66_v60, 0  ;;  %v2224_v5 = vsub.f32 %v32_v58, %v2209_v61 }
  0x22   :  { %v149_v50 = vand.u32 4294901760, %v148_v44  ;;  %v1093_v51 = vand.u32 4294901760, %v1092_v45  ;;  %v155_v52 = vand.u32 4294901760, %v154_v46  ;;  %v1099_v54 = vand.u32 4294901760, %v1098_v48 }
  0x23   :  { %v2221_v4 = vsub.f32 %v54_v57, %v2211_v62  ;;  %v2228_v6 = vand.u32 4294901760, %v74_v2  ;;  %v2230_v7 = vand.u32 4294901760, %v50_v0  ;;  %v2232_v8 = vand.u32 4294901760, %v31_v1 }
  0x24   :  { %150 = vmatprep.mubr.f32.mxu1 %v149_v50  ;;  %1094 = vmatprep.mubr.f32.mxu0 %v1093_v51  ;;  %v2234_v12 = vand.u32 4294901760, %v77_v3  ;;  %v635_v13 = vand.u32 4294901760, %v2224_v5  ;;  %v2099_v20 = vmov 0.0  }
  0x25   :  { %156 = vmatmul.mubr.f32.vlgmr.msra.gmra.mrb[0].mxu1 %v155_v52  ;;  %1100 = vmatmul.mubr.f32.vlgmr.msra.gmra.mrb[0].mxu0 %v1099_v54  ;;  %v1562_v15 = vsub.f32 %v74_v2, %v2228_v6  ;;  %v640_v16 = vsub.f32 %v31_v1, %v2232_v8 }
  0x26   :  { %172 = vmatpush1.xpose.msra.mxu1 %v171_v47  ;;  %1116 = vmatpush1.xpose.msra.mxu0 %v1115_v53  ;;  %v1573_v17 = vsub.f32 %v77_v3, %v2234_v12 }
  0x27   :  { %236 = vmatprep.mubr.f32.mxu1 %v2170_v22  ;;  %245 = vmatprep.subr.mxu1 %v2162_v19  ;;  %v636_v19 = vsub.f32 %v2224_v5, %v635_v13 }
  0x28   :  { %1180 = vmatprep.mubr.f32.mxu0 %v2172_v23  ;;  %1189 = vmatprep.subr.mxu0 %v1106_v28 }
  0x29   :  { %v637_v28 = vand.u32 4294901760, %v636_v19 }
  0x2d   :  { %238 = vmatmul.mubr.f32.vlgmr.msra.gmra.mrb[0].mxu1 %v2174_v24  ;;  %1182 = vmatmul.mubr.f32.vlgmr.msra.gmra.mrb[0].mxu0 %v2178_v27 }
  0x2e   :  { %248 = vmatpush1.xpose.msra.mxu1 %v2158_v18  ;;  %1192 = vmatpush1.xpose.msra.mxu0 %v2168_v21 }
  0x2f   :  { %313 = vmatprep.mubr.f32.mxu1 %v146_v29  ;;  %322 = vmatprep.subr.mxu1 %v2140_v9 }
  0x30   :  { %1257 = vmatprep.mubr.f32.mxu0 %v1090_v30  ;;  %1266 = vmatprep.subr.mxu0 %v2144_v11 }
  0x35   :  { %316 = vmatmul.mubr.f32.vlgmr.msra.gmra.mrb[0].mxu1 %v152_v31  ;;  %1260 = vmatmul.mubr.f32.vlgmr.msra.gmra.mrb[0].mxu0 %v1096_v35 }
  0x36   :  { %324 = vmatpush1.xpose.msra.mxu1 %v2142_v10  ;;  %1268 = vmatpush1.xpose.msra.mxu0 %v2151_v14 }
  0x37   :  { %390 = vmatprep.mubr.f32.mxu1 %v147_v37  ;;  %402 = vmatprep.subr.mxu1 %v163_v25  ;;  %v641_v25 = vand.u32 4294901760, %v640_v16 }
  0x38   :  { %1334 = vmatprep.mubr.f32.mxu0 %v1091_v38  ;;  %1346 = vmatprep.subr.mxu0 %v1107_v36 }
  0x39   :  { %v642_v30 = vsub.f32 %v640_v16, %v641_v25 }
  0x3b   :  { %v643_v33 = vand.u32 4294901760, %v642_v30 }
  0x3d   :  { %394 = vmatmul.mubr.f32.vlgmr.msra.gmra.mrb[0].mxu1 %v153_v39  ;;  %1338 = vmatmul.mubr.f32.vlgmr.msra.gmra.mrb[0].mxu0 %v1097_v42 }
  0x3e   :  { %406 = vmatpush1.xpose.msra.mxu1 %v169_v26  ;;  %1350 = vmatpush1.xpose.msra.mxu0 %v1113_v32 }
  0x3f   :  { %470 = vmatprep.mubr.f32.mxu1 %v2170_v22  ;;  %478 = vmatprep.subr.mxu1 %v2140_v9  ;;  %v619_v9 = vand.u32 4294901760, %v2221_v4 }
  0x40   :  { %1414 = vmatprep.mubr.f32.mxu0 %v2172_v23  ;;  %1422 = vmatprep.subr.mxu0 %v2144_v11  ;;  %v624_v11 = vsub.f32 %v50_v0, %v2230_v7 }
  0x41   :  { %v620_v18 = vsub.f32 %v2221_v4, %v619_v9 }
  0x42   :  { %v625_v21 = vand.u32 4294901760, %v624_v11 }
  0x43   :  { %v621_v26 = vand.u32 4294901760, %v620_v18 }
  0x45   :  { %472 = vmatmul.mubr.f32.vlgmr.msra.gmra.mrb[0].mxu1 %v2174_v24  ;;  %1416 = vmatmul.mubr.f32.vlgmr.msra.gmra.mrb[0].mxu0 %v2178_v27 }
  0x46   :  { %480 = vmatpush1.xpose.msra.mxu1 %v2142_v10  ;;  %1424 = vmatpush1.xpose.msra.mxu0 %v2151_v14  ;;  %v1563_v10 = vand.u32 4294901760, %v1562_v15  ;;  %v1574_v14 = vand.u32 4294901760, %v1573_v17 }
  0x47   :  { %544 = vmatprep.mubr.f32.mxu1 %v2170_v22  ;;  %552 = vmatprep.subr.mxu1 %v2209_v61  ;;  %v626_v22 = vsub.f32 %v624_v11, %v625_v21 }
  0x48   :  { %1488 = vmatprep.mubr.f32.mxu0 %v2172_v23  ;;  %1970 = vmatprep.subr.mxu0 %v2099_v20  ;;  %v1564_v29 = vsub.f32 %v1562_v15, %v1563_v10  ;;  %v1575_v23 = vsub.f32 %v1573_v17, %v1574_v14 }
  0x49   :  { %v627_v31 = vand.u32 4294901760, %v626_v22 }
  0x4a   :  { %v1565_v32 = vand.u32 4294901760, %v1564_v29 }
  0x4d   :  { %546 = vmatmul.mubr.f32.vlgmr.msra.gmra.mrb[0].mxu1 %v2174_v24  ;;  %1490 = vmatmul.mubr.f32.vlgmr.msra.gmra.mrb[0].mxu0 %v2178_v27  ;;  %v1576_v24 = vand.u32 4294901760, %v1575_v23  ;;  %v37_v27 = vstv %s2295_s2 }
  0x4e   :  { %554 = vmatpush1.xpose.msra.mxu1 %v2232_v8  ;;  %1971 = vmatpush3.xpose.msra.mxu0 %v2234_v12 }
  0x4f   :  { %622 = vmatprep.mubr.f32.mxu1 %v621_v26  ;;  %638 = vmatprep.subr.mxu1 %v637_v28 }
  0x50   :  { %1972 = vmatprep.mubr.msk.f32.mxu0 %vm2100_vm1, %v2099_v20  ;;  %1975 = vmatprep.subr.mxu0 %v2099_v20 }
  0x55   :  { %628 = vmatmul.mubr.f32.vlgmr.msra.gmra.mrb[0].mxu1 %v627_v31  ;;  %1973 = vmatmul.mubr.f32.vlgmr.msra.gmra.mrb[0].mxu0 %v1565_v32 }
  0x56   :  { %644 = vmatpush1.xpose.msra.mxu1 %v643_v33  ;;  %1976 = vmatpush3.xpose.msra.mxu0 %v1576_v24 }
  0x57   :  { %708 = vmatprep.mubr.f32.mxu1 %v2211_v62  ;;  %717 = vmatprep.subr.mxu1 %v2224_v5 }
  0x58   :  { %1977 = vmatprep.mubr.msk.f32.mxu0 %vm2100_vm1, %v2099_v20  ;;  %1980 = vmatprep.subr.mxu0 %v2099_v20 }
  0x5d   :  { %710 = vmatmul.mubr.f32.vlgmr.msra.gmra.mrb[0].mxu1 %v2230_v7  ;;  %1978 = vmatmul.mubr.f32.vlgmr.msra.gmra.mrb[0].mxu0 %v2228_v6 }
  0x5e   :  { %720 = vmatpush1.xpose.msra.mxu1 %v640_v16  ;;  %1981 = vmatpush3.xpose.msra.mxu0 %v1573_v17 }
  0x5f   :  { %785 = vmatprep.mubr.f32.mxu1 %v2221_v4  ;;  %794 = vmatprep.subr.mxu1 %v2209_v61 }
  0x60   :  { %1982 = vmatprep.mubr.msk.f32.mxu0 %vm2100_vm1, %v2099_v20  ;;  %1985 = vmatprep.subr.mxu0 %v2099_v20 }
  0x65   :  { %788 = vmatmul.mubr.f32.vlgmr.msra.gmra.mrb[0].mxu1 %v624_v11  ;;  %1983 = vmatmul.mubr.f32.vlgmr.msra.gmra.mrb[0].mxu0 %v1562_v15 }
  0x66   :  { %796 = vmatpush1.xpose.msra.mxu1 %v2232_v8  ;;  %1986 = vmatpush3.xpose.msra.mxu0 %v2234_v12 }
  0x67   :  { %862 = vmatprep.mubr.f32.mxu1 %v619_v9  ;;  %874 = vmatprep.subr.mxu1 %v635_v13 }
  0x68   :  { %1987 = vmatprep.mubr.msk.f32.mxu0 %vm2100_vm1, %v2099_v20  ;;  %1990 = vmatprep.subr.mxu0 %v2099_v20 }
  0x6d   :  { %866 = vmatmul.mubr.f32.vlgmr.msra.gmra.mrb[0].mxu1 %v625_v21  ;;  %1988 = vmatmul.mubr.f32.vlgmr.msra.gmra.mrb[0].mxu0 %v1563_v10 }
  0x6e   :  { %878 = vmatpush1.xpose.msra.mxu1 %v641_v25  ;;  %1991 = vmatpush3.xpose.msra.mxu0 %v1574_v14 }
  0x6f   :  { %942 = vmatprep.mubr.f32.mxu1 %v2211_v62  ;;  %950 = vmatprep.subr.mxu1 %v2209_v61 }
  0x70   :  { %1992 = vmatprep.mubr.msk.f32.mxu0 %vm2100_vm1, %v2099_v20  ;;  %1995 = vmatprep.subr.mxu0 %v2099_v20 }
  0x75   :  { %944 = vmatmul.mubr.f32.vlgmr.msra.gmra.mrb[0].mxu1 %v2230_v7  ;;  %1993 = vmatmul.mubr.f32.vlgmr.msra.gmra.mrb[0].mxu0 %v2228_v6 }
  0x76   :  { %952 = vmatpush1.xpose.msra.mxu1 %v2232_v8  ;;  %1996 = vmatpush3.xpose.msra.mxu0 %v2234_v12 }
  0x77   :  { %1016 = vmatprep.mubr.f32.mxu1 %v2211_v62  ;;  %1997 = vmatprep.mubr.msk.f32.mxu0 %vm2100_vm1, %v2099_v20 }
  0x7d   :  { %1018 = vmatmul.mubr.f32.vlgmr.msra.gmra.mrb[0].mxu1 %v2230_v7  ;;  %1998 = vmatmul.mubr.f32.vlgmr.msra.gmra.mrb[0].mxu0 %v2228_v6 }
 0x150   :  { %v1019_v34 = vpop.f32.mrb[0].mxu1  ;;  %v1937_v35 = vpop.f32.mrb[0].mxu0 }
 0x151   :  { %v2000_v36 = vadd.f32 %v1019_v34, %v37_v27  ;;  %v1021_v37 = vpop.f32.mrb[1].mxu1  ;;  %v1999_v38 = vpop.f32.mrb[1].mxu0 }
 0x153   :  { %v2001_v39 = vadd.f32 %v2000_v36, %v1937_v35 }
 0x155   :  { %1942 = vst.msk [vmem:[#allocation6] sm:$0x1] %vm1941_vm2, %v2001_v39 }
 0x156   :  { %2083 = shalt.err (!%p2080_p12)
}
 0x157   :  { %s2084_s4 = scalar_lea.hbm %s2296_s3, 16 }
 0x158   :  { %p2085_p13 = scmp.ne.s32.totalorder %s2296_s3, %s2084_s4  ;;  %p2088_p0 = scmp.lt.u32.totalorder %s2084_s4, %s2296_s3 }
 0x15a   :  { %p2090_p1 = pnand %p2088_p0, %p2085_p13 }
 0x15c   :  { %2093 = shalt.err (!%p2090_p1)
}
 0x15d   :  { %1952 = dma.vmem_to_hbm [thread:$0]  %s1950_s27, 16, %s2296_s3, [#allocation5]  }
 0x15e   :  { %2096 = dma.done.wait [#allocation5], 16  }
 0x15f   :  { %2097 = vsyncadd [#allocation5], 4294967280 }
 0x160   :  { %1956 = vsyncpa [#allocation4], 1 }
 0x161   :  { %1957 = vsyncpa [#allocation5], 1 }

</bundles_post_ra>
